<compile_context>
chip_gen: v7x
topology: tpu7x:2x2x1
jax: 0.10.0
libtpu: 0.0.40
codegen_flags: <defaults>
</compile_context>

<pallas_src>
import jax
import jax.numpy as jnp
from jax.experimental import pallas as pl
from jax.experimental.pallas import tpu as pltpu


def make_gin_kernel_resident(residual: bool, tile_m: int, tile_k: int):
    """h is a single VMEM-resident (N, D_in) block; slice chunks in-kernel."""

    def gin_kernel(eps_ref, a_ref, h_ref, w_ref, shift_ref, o_ref, acc_ref):
        i = pl.program_id(0)
        k = pl.program_id(1)
        nk = pl.num_programs(1)

        @pl.when(k == 0)
        def _():
            acc_ref[...] = jnp.zeros_like(acc_ref)

        # Neighborhood sum aggregation (K-blocked): acc += A_blk @ h_blk.
        # A is 0/1 (exact in bf16); h chunk rounded to bf16; f32 accumulate.
        k_start = pl.multiple_of(k * tile_k, tile_k)
        h_chunk = h_ref[pl.ds(k_start, tile_k), :].astype(jnp.bfloat16)
        acc_ref[...] += jnp.dot(a_ref[...], h_chunk,
                                preferred_element_type=jnp.float32)

        @pl.when(k == nk - 1)
        def _():
            i_start = pl.multiple_of(i * tile_m, tile_m)
            h_self = h_ref[pl.ds(i_start, tile_m), :]          # f32, exact
            eps = eps_ref[0]

            # GIN update: (1 + eps) * h_v + sum of neighbors.
            z = (1.0 + eps) * h_self + acc_ref[...]

            # apply_func + BatchNorm1d (inference), folded: y = z @ W' + shift'
            y = jnp.dot(z.astype(jnp.bfloat16), w_ref[...],
                        preferred_element_type=jnp.float32) + shift_ref[...]

            # activation = ReLU
            y = jnp.maximum(y, 0.0)

            # residual connection (only valid when indim == outdim)
            if residual:
                y = y + h_self

            # dropout (eval mode) = identity
            o_ref[...] = y.astype(o_ref.dtype)

    return gin_kernel


def make_gin_kernel_streamed(residual: bool):
    """Fallback: h chunks streamed as bf16, self rows streamed as f32."""

    def gin_kernel(eps_ref, a_ref, h_chunk_ref, h_self_ref, w_ref, shift_ref,
                   o_ref, acc_ref):
        k = pl.program_id(1)
        nk = pl.num_programs(1)

        @pl.when(k == 0)
        def _():
            acc_ref[...] = jnp.zeros_like(acc_ref)

        acc_ref[...] += jnp.dot(a_ref[...], h_chunk_ref[...],
                                preferred_element_type=jnp.float32)

        @pl.when(k == nk - 1)
        def _():
            h_self = h_self_ref[...]
            eps = eps_ref[0]
            z = (1.0 + eps) * h_self + acc_ref[...]
            y = jnp.dot(z.astype(jnp.bfloat16), w_ref[...],
                        preferred_element_type=jnp.float32) + shift_ref[...]
            y = jnp.maximum(y, 0.0)
            if residual:
                y = y + h_self
            o_ref[...] = y.astype(o_ref.dtype)

    return gin_kernel


def gin_layer_pallas(A, h, W, b, bn_scale, bn_shift, eps, *,
                     residual=True, tile_m=256, tile_k=1024,
                     resident_h_budget_bytes=16 * 1024 * 1024):
    N, D_in = h.shape
    D_out = W.shape[1]

    tile_m = min(tile_m, N)
    tile_k = min(tile_k, N)
    # Keep >= 2 row tiles when possible so the "parallel" axis can still be
    # split across the two TensorCores on v7x.
    if tile_m == N and N % 2 == 0 and (N // 2) % 8 == 0:
        tile_m = N // 2
    assert N % tile_m == 0 and N % tile_k == 0, "pad N to a tile multiple"
    if residual:
        assert D_in == D_out, "residual requires indim == outdim"

    # Fold bias + inference-mode BatchNorm into the linear weights:
    #   (z @ W + b) * scale + shift == z @ (W * scale) + (b * scale + shift)
    # W' kept in bf16 so the epilogue matmul takes the bf16 MXU path.
    W_f = (W * bn_scale).astype(jnp.bfloat16)                   # (D_in, D_out)
    shift_f = (b * bn_scale + bn_shift).astype(jnp.float32)     # (1, D_out)

    # Binary adjacency is exact in bf16; halves its HBM/DMA traffic and keeps
    # the aggregation matmul on the bf16 MXU path.
    A_bf16 = A.astype(jnp.bfloat16)

    eps_arr = jnp.asarray([eps], dtype=jnp.float32)
    grid = (N // tile_m, N // tile_k)

    # Decide whether h fits VMEM as a single resident block (assume 2 buffers
    # even though its block index is constant, to stay conservative on v7x).
    h_resident_bytes = 2 * N * D_in * 4
    resident = h_resident_bytes <= resident_h_budget_bytes

    if resident:
        kernel = make_gin_kernel_resident(residual, tile_m, tile_k)
        in_specs = [
            pl.BlockSpec((tile_m, tile_k), lambda i, k, eps: (i, k)),  # A blk (bf16)
            pl.BlockSpec((N, D_in),        lambda i, k, eps: (0, 0)),  # h, VMEM-resident
            pl.BlockSpec((D_in, D_out),    lambda i, k, eps: (0, 0)),  # W' (bf16)
            pl.BlockSpec((1, D_out),       lambda i, k, eps: (0, 0)),  # shift'
        ]
        args = (eps_arr, A_bf16, h, W_f, shift_f)
        h_bytes = h_resident_bytes
    else:
        kernel = make_gin_kernel_streamed(residual)
        h_bf16 = h.astype(jnp.bfloat16)
        in_specs = [
            pl.BlockSpec((tile_m, tile_k), lambda i, k, eps: (i, k)),  # A blk (bf16)
            pl.BlockSpec((tile_k, D_in),   lambda i, k, eps: (k, 0)),  # h chunk (bf16)
            pl.BlockSpec((tile_m, D_in),   lambda i, k, eps: (i, 0)),  # h self rows (f32)
            pl.BlockSpec((D_in, D_out),    lambda i, k, eps: (0, 0)),  # W' (bf16)
            pl.BlockSpec((1, D_out),       lambda i, k, eps: (0, 0)),  # shift'
        ]
        args = (eps_arr, A_bf16, h_bf16, h, W_f, shift_f)
        h_bytes = 2 * tile_k * D_in * 2 + 2 * tile_m * D_in * 4

    # Size the VMEM limit to what is actually needed (+ headroom), capped so
    # it is safe on v7x's 64 MiB physical VMEM.
    needed = (2 * tile_m * tile_k * 2        # A blocks, double-buffered bf16
              + h_bytes                      # h (resident or streamed)
              + 2 * D_in * D_out * 2         # W' bf16
              + 2 * tile_m * D_out * 4       # output tile
              + tile_m * D_in * 4            # f32 accumulator scratch
              + (4 << 20))                   # headroom
    vmem_limit = min(max(needed, 16 << 20), 48 << 20)

    return pl.pallas_call(
        kernel,
        out_shape=jax.ShapeDtypeStruct((N, D_out), h.dtype),
        grid_spec=pltpu.PrefetchScalarGridSpec(
            num_scalar_prefetch=1,                               # eps -> SMEM
            grid=grid,
            in_specs=in_specs,
            out_specs=pl.BlockSpec((tile_m, D_out), lambda i, k, eps: (i, 0)),
            scratch_shapes=[pltpu.VMEM((tile_m, D_in), jnp.float32)],  # neigh acc
        ),
        compiler_params=pltpu.CompilerParams(
            dimension_semantics=("parallel", "arbitrary"),
            vmem_limit_bytes=vmem_limit,
        ),
    )(*args)


def gin_layer_ref(A, h, W, b, bn_scale, bn_shift, eps):
    neigh = A @ h
    z = (1.0 + eps) * h + neigh
    y = z @ W + b
    y = y * bn_scale + bn_shift
    y = jnp.maximum(y, 0.0)
    y = y + h
    return y


if __name__ == "__main__":
    key = jax.random.PRNGKey(0)
    k_adj, k_h, k_w, k_b, k_g, k_bt = jax.random.split(key, 6)

    N = 512        # nodes: grid = (4, 2) -> exercises both axes + accumulation
    D = 128        # indim == outdim so the residual path is active
    init_eps = 0.0

    # Dense binary adjacency (edge u -> v), deterministic.
    A = (jax.random.uniform(k_adj, (N, N)) < 0.05).astype(jnp.float32)
    h = jax.random.normal(k_h, (N, D), dtype=jnp.float32)

    # apply_func: Linear(D, D)
    W = jax.random.normal(k_w, (D, D), dtype=jnp.float32) * (1.0 / jnp.sqrt(D))
    b = jax.random.normal(k_b, (1, D), dtype=jnp.float32) * 0.01

    # BatchNorm1d(D) parameters + running stats, folded into scale/shift.
    gamma = 1.0 + 0.1 * jax.random.normal(k_g, (1, D), dtype=jnp.float32)
    beta = 0.1 * jax.random.normal(k_bt, (1, D), dtype=jnp.float32)
    run_mean = jnp.zeros((1, D), dtype=jnp.float32)
    run_var = jnp.ones((1, D), dtype=jnp.float32)
    bn_eps = 1e-5
    bn_scale = gamma / jnp.sqrt(run_var + bn_eps)
    bn_shift = beta - run_mean * bn_scale

    out = gin_layer_pallas(A, h, W, b, bn_scale, bn_shift, init_eps,
                           tile_m=128, tile_k=256)
    out = jax.block_until_ready(out)

    ref = gin_layer_ref(A, h, W, b, bn_scale, bn_shift, init_eps)
    assert out.shape == (N, D)
    # bf16 MXU paths introduce ~2^-9 relative rounding vs. the f32 reference.
    assert jnp.allclose(out, ref, rtol=5e-2, atol=1e-1), \
        float(jnp.max(jnp.abs(out - ref)))

    print("KERNEL_OK")
</pallas_src>

<mosaic_0001>
module attributes {stable_mosaic.version = 11 : i64} {
  func.func @gin_kernel(%arg0: i32, %arg1: i32, %arg2: memref<1xf32, #tpu.memory_space<smem>>, %arg3: memref<128x256xbf16, #tpu.memory_space<vmem>>, %arg4: memref<512x128xf32, #tpu.memory_space<vmem>>, %arg5: memref<128x128xbf16, #tpu.memory_space<vmem>>, %arg6: memref<1x128xf32, #tpu.memory_space<vmem>>, %arg7: memref<128x128xf32, #tpu.memory_space<vmem>>, %arg8: memref<128x128xf32, #tpu.memory_space<vmem>>) attributes {dimension_semantics = [#tpu.dimension_semantics<parallel>, #tpu.dimension_semantics<arbitrary>], iteration_bounds = array<i64: 4, 2>, scalar_prefetch = 1 : i64, scratch_operands = 1 : i64, tpu.core_type = #tpu.core_type<tc>, window_params = [{transform_indices = @transform_0, window_bounds = array<i64: 128, 256>}, {pipeline_mode = #tpu.pipeline_mode<synchronous>, transform_indices = @transform_1, window_bounds = array<i64: 512, 128>}, {pipeline_mode = #tpu.pipeline_mode<synchronous>, transform_indices = @transform_2, window_bounds = array<i64: 128, 128>}, {pipeline_mode = #tpu.pipeline_mode<synchronous>, transform_indices = @transform_3, window_bounds = array<i64: 1, 128>}, {transform_indices = @transform_4, window_bounds = array<i64: 128, 128>}]} {
    %c0_i32 = arith.constant 0 : i32
    %0 = arith.cmpi eq, %arg1, %c0_i32 : i32
    %1 = arith.extui %0 : i1 to i32
    %c0_i32_0 = arith.constant 0 : i32
    %2 = arith.cmpi ne, %1, %c0_i32_0 : i32
    scf.if %2 {
      %cst_8 = arith.constant 0.000000e+00 : f32
      %16 = vector.broadcast %cst_8 : f32 to vector<128x128xf32>
      %c0_9 = arith.constant 0 : index
      %c0_10 = arith.constant 0 : index
      %17 = vector.load %arg8[%c0_9, %c0_10] : memref<128x128xf32, #tpu.memory_space<vmem>>, vector<128x128xf32>
      tpu.vector_store %arg8[%c0_9, %c0_10], %16 {strides = array<i32>} : memref<128x128xf32, #tpu.memory_space<vmem>>, vector<128x128xf32>,
    } else {
    }
    %c256_i32 = arith.constant 256 : i32
    %3 = arith.muli %arg1, %c256_i32 : i32
    %4 = tpu.assume_multiple %3, 256 : i32
    %5 = arith.index_cast %4 : i32 to index
    %c0 = arith.constant 0 : index
    %6 = vector.load %arg4[%5, %c0] : memref<512x128xf32, #tpu.memory_space<vmem>>, vector<256x128xf32>
    %7 = arith.truncf %6 : vector<256x128xf32> to vector<256x128xbf16>
    %c0_1 = arith.constant 0 : index
    %c0_2 = arith.constant 0 : index
    %8 = vector.load %arg8[%c0_1, %c0_2] : memref<128x128xf32, #tpu.memory_space<vmem>>, vector<128x128xf32>
    %c0_3 = arith.constant 0 : index
    %c0_4 = arith.constant 0 : index
    %9 = vector.load %arg3[%c0_3, %c0_4] : memref<128x256xbf16, #tpu.memory_space<vmem>>, vector<128x256xbf16>
    %cst = arith.constant dense<0.000000e+00> : vector<128x128xf32>
    %10 = tpu.matmul %9, %7, %cst {dimension_numbers = #tpu.dot_dimension_numbers<[1], [0], [0], [1], [0, 0, 1, 1], [], []>} : vector<128x256xbf16>, vector<256x128xbf16>, vector<128x128xf32> -> vector<128x128xf32>
    %11 = arith.addf %8, %10 : vector<128x128xf32>
    %c0_5 = arith.constant 0 : index
    %c0_6 = arith.constant 0 : index
    %12 = vector.load %arg8[%c0_5, %c0_6] : memref<128x128xf32, #tpu.memory_space<vmem>>, vector<128x128xf32>
    tpu.vector_store %arg8[%c0_5, %c0_6], %11 {strides = array<i32>} : memref<128x128xf32, #tpu.memory_space<vmem>>, vector<128x128xf32>,
    %c1_i32 = arith.constant 1 : i32
    %13 = arith.cmpi eq, %arg1, %c1_i32 : i32
    %14 = arith.extui %13 : i1 to i32
    %c0_i32_7 = arith.constant 0 : i32
    %15 = arith.cmpi ne, %14, %c0_i32_7 : i32
    scf.if %15 {
      %c128_i32 = arith.constant 128 : i32
      %16 = arith.muli %arg0, %c128_i32 : i32
      %17 = tpu.assume_multiple %16, 128 : i32
      %18 = arith.index_cast %17 : i32 to index
      %c0_8 = arith.constant 0 : index
      %19 = vector.load %arg4[%18, %c0_8] : memref<512x128xf32, #tpu.memory_space<vmem>>, vector<128x128xf32>
      %c0_9 = arith.constant 0 : index
      %20 = memref.load %arg2[%c0_9] : memref<1xf32, #tpu.memory_space<smem>>
      %cst_10 = arith.constant 1.000000e+00 : f32
      %21 = arith.addf %cst_10, %20 : f32
      %22 = vector.broadcast %21 : f32 to vector<128x128xf32>
      %23 = arith.mulf %22, %19 : vector<128x128xf32>
      %c0_11 = arith.constant 0 : index
      %c0_12 = arith.constant 0 : index
      %24 = vector.load %arg8[%c0_11, %c0_12] : memref<128x128xf32, #tpu.memory_space<vmem>>, vector<128x128xf32>
      %25 = arith.addf %23, %24 : vector<128x128xf32>
      %26 = arith.truncf %25 : vector<128x128xf32> to vector<128x128xbf16>
      %c0_13 = arith.constant 0 : index
      %c0_14 = arith.constant 0 : index
      %27 = vector.load %arg5[%c0_13, %c0_14] : memref<128x128xbf16, #tpu.memory_space<vmem>>, vector<128x128xbf16>
      %cst_15 = arith.constant dense<0.000000e+00> : vector<128x128xf32>
      %28 = tpu.matmul %26, %27, %cst_15 {dimension_numbers = #tpu.dot_dimension_numbers<[1], [0], [0], [1], [0, 0, 1, 1], [], []>} : vector<128x128xbf16>, vector<128x128xbf16>, vector<128x128xf32> -> vector<128x128xf32>
      %c0_16 = arith.constant 0 : index
      %c0_17 = arith.constant 0 : index
      %29 = vector.load %arg6[%c0_16, %c0_17] : memref<1x128xf32, #tpu.memory_space<vmem>>, vector<1x128xf32>
      %30 = vector.broadcast %29 : vector<1x128xf32> to vector<128x128xf32>
      %31 = arith.addf %28, %30 : vector<128x128xf32>
      %cst_18 = arith.constant 0.000000e+00 : f32
      %32 = vector.broadcast %cst_18 : f32 to vector<128x128xf32>
      %33 = arith.maximumf %31, %32 : vector<128x128xf32>
      %34 = arith.addf %33, %19 : vector<128x128xf32>
      %c0_19 = arith.constant 0 : index
      %c0_20 = arith.constant 0 : index
      %35 = vector.load %arg7[%c0_19, %c0_20] : memref<128x128xf32, #tpu.memory_space<vmem>>, vector<128x128xf32>
      tpu.vector_store %arg7[%c0_19, %c0_20], %34 {strides = array<i32>} : memref<128x128xf32, #tpu.memory_space<vmem>>, vector<128x128xf32>,
    } else {
    }
    return
  }
  func.func @transform_0(%arg0: i32, %arg1: i32, %arg2: memref<1xf32, #tpu.memory_space<smem>>) -> (i32, i32) {
    %c0_i32 = arith.constant 0 : i32
    return %arg0, %arg1 : i32, i32
  }
  func.func @transform_1(%arg0: i32, %arg1: i32, %arg2: memref<1xf32, #tpu.memory_space<smem>>) -> (i32, i32) {
    %c0_i32 = arith.constant 0 : i32
    %c0_i32_0 = arith.constant 0 : i32
    %c0_i32_1 = arith.constant 0 : i32
    return %c0_i32, %c0_i32_0 : i32, i32
  }
  func.func @transform_2(%arg0: i32, %arg1: i32, %arg2: memref<1xf32, #tpu.memory_space<smem>>) -> (i32, i32) {
    %c0_i32 = arith.constant 0 : i32
    %c0_i32_0 = arith.constant 0 : i32
    %c0_i32_1 = arith.constant 0 : i32
    return %c0_i32, %c0_i32_0 : i32, i32
  }
  func.func @transform_3(%arg0: i32, %arg1: i32, %arg2: memref<1xf32, #tpu.memory_space<smem>>) -> (i32, i32) {
    %c0_i32 = arith.constant 0 : i32
    %c0_i32_0 = arith.constant 0 : i32
    %c0_i32_1 = arith.constant 0 : i32
    return %c0_i32, %c0_i32_0 : i32, i32
  }
  func.func @transform_4(%arg0: i32, %arg1: i32, %arg2: memref<1xf32, #tpu.memory_space<smem>>) -> (i32, i32) {
    %c0_i32 = arith.constant 0 : i32
    %c0_i32_0 = arith.constant 0 : i32
    return %arg0, %c0_i32 : i32, i32
  }
}

</mosaic_0001>

<bundles_post_ra>
// kernel: tpu_custom_call.1
= control target key start
LH: loop header
LB: loop body
LE: loop exit
PB: predicated region body
PF: predicated region fallthrough
CT: control target
= control target key end

     0   :  { %s2109_s0 = inlined_call_operand.<no memory space> [shape: f32[1], index: 0, kind: input, shape index: {}]   ;;  %s2110_s1 = inlined_call_operand.hbm [shape: bf16[512,512], index: 1, kind: input, shape index: {}]   ;;  %s2111_s2 = inlined_call_operand.hbm [shape: f32[512,128], index: 2, kind: input, shape index: {}]   ;;  %s2112_s3 = inlined_call_operand.hbm [shape: bf16[128,128], index: 3, kind: input, shape index: {}]   ;;  %s2113_s4 = inlined_call_operand.vmem [shape: f32[1,128], index: 4, kind: input, shape index: {}]   ;;  %s2114_s5 = inlined_call_operand.hbm [shape: f32[512,128], index: 5, kind: output, shape index: {}]  }
   0x1   :  { %2128 = sst [smem:[#allocation20_spill]] %s2111_s2 }
   0x2   :  { %2129 = sst [smem:[#allocation21_spill]] %s2112_s3 }
   0x3   :  { %2130 = sst [smem:[#allocation22_spill]] %s2114_s5 }
   0x4   :  { %10 = sst [smem:[#allocation4]] %s2109_s0 }
   0x5   :  { %11 = vsyncpa [#allocation6], 0 }
   0x6   :  { %13 = vsyncpa [#allocation6 + $0x1], 0 }
   0x7   :  { %14 = vsyncpa [#allocation9], 0 }
   0x8   :  { %15 = vsyncpa [#allocation7], 0 }
   0x9   :  { %17 = vsyncpa [#allocation7 + $0x1], 0  ;;  %s1618_s20 = smov 0   ;;  %s1620_s21 = smov 0  }
   0xa   :  { %s1622_s22 = smov 0   ;;  %s1624_s23 = smov 0  }
   0xb   :  { %s1626_s24 = smov 0   ;;  %s1628_s25 = smov 0  }
   0xc   :  { %s1630_s26 = smov 0   ;;  %s1632_s0 = smov 0  }
   0xd   :  { %s1634_s27 = smov 0   ;;  %s1636_s28 = smov 0  }
   0xe   :  { %s1638_s29 = smov 0  }
   0xf LB: > { %2131 = sst [smem:[#allocation15_spill]] %s1531_s20  ;;  %s1000_s30 = sadd.s32 4294967295, %s1571_s29   ;;  %s1571_s29 = sphi %s1638_s29, %s23_s29   ;;  %s1567_s28 = sphi %s1636_s28, %s2168_s28   ;;  %s1563_s27 = sphi %s1634_s27, %s2167_s27   ;;  %s1559_s0 = sphi %s1632_s0, %s2166_s0   ;;  %s1555_s26 = sphi %s1630_s26, %s2158_s26   ;;  %s1551_s25 = sphi %s1628_s25, %s2165_s25   ;;  %s1547_s24 = sphi %s1626_s24, %s2164_s24   ;;  %s1543_s23 = sphi %s1624_s23, %s2163_s23   ;;  %s1539_s22 = sphi %s1622_s22, %s2162_s22   ;;  %s1535_s21 = sphi %s1620_s21, %s2161_s21   ;;  %s1531_s20 = sphi %s1618_s20, %s2160_s20  }
  0x10   : > { %2132 = sst [smem:[#allocation16_spill]] %s1563_s27  ;;  %s1001_s6 = sadd.s32 4294967294, %s1571_s29  }
  0x11   : > { %2133 = sst [smem:[#allocation17_spill]] %s1571_s29  ;;  %p51_p0 = scmp.ne.s32.totalorder %s1551_s25, %s1547_s24 }
  0x12   : > { %p52_p1 = scmp.eq.s32.totalorder %s1571_s29, 0  ;;  %p57_p2 = scmp.ne.s32.totalorder %s1547_s24, %s1543_s23 }
  0x13   : > { %p1678_p3 = scmp.eq.s32.totalorder %s1000_s30, 0  ;;  %p143_p5 = scmp.ne.s32.totalorder %s1539_s22, %s1535_s21 }
  0x14   : > { %p1683_p4 = por %p52_p1, %p51_p0  ;;  %p144_p7 = scmp.eq.s32.totalorder %s1000_s30, 7 }
  0x15   : > { %s2134_s8 = scalar_select %p1678_p3, 1, 0 }
  0x16   : > { %p1691_p6 = por %p1678_p3, %p57_p2  ;;  %p149_p8 = scmp.ne.s32.totalorder %s1535_s21, %s1531_s20 }
  0x17   : > { %p150_p9 = scmp.eq.s32.totalorder %s1001_s6, 7  ;;  %p1697_p10 = por %p144_p7, %p143_p5 }
  0x18   : > { %s2136_s11 = scalar_select %p1691_p6, 1, 0 }
  0x19   : > { %s2137_s12 = scalar_select %p1697_p10, 1, 0 }
  0x1a   : > { %p1002_p11 = scmp.ge.s32.totalorder %s1571_s29, 1  ;;  %p1702_p12 = por %p150_p9, %p149_p8 }
  0x1b   : > { %p157_p13 = scmp.lt.s32.totalorder %s1571_s29, 9  ;;  %s1573_s15 = smov [#allocation8]  }
  0x1c   : > { %s2138_s13 = scalar_select %p1702_p12, 1, 0 }
  0x1d   : > { %p1707_p0 = pnand %p1002_p11, %p157_p13  ;;  %s169_s16 = sshll.u32 %s1573_s15, 4  ;;  %s1711_s16 = int_to_ptr.vmem [resolvable:$true] %s169_s16 }
  0x1e   : > { %2139 = sst [smem:[#allocation18_spill]] %s2138_s13  ;;  %p1225_p2 = scmp.lt.s32.totalorder %s1571_s29, 8 }
  0x1f   : > { %p1208_p1 = pneg %p1707_p0  ;;  %s1574_s19 = smov [#allocation10]  }
  0x20   : > { %p1724_p7 = pnand %p1225_p2, %p1683_p4  ;;  %s182_s23 = sshll.u32 %s1574_s19, 4  ;;  %s1728_s23 = int_to_ptr.vmem [resolvable:$true] %s182_s23 }
  0x21   : > { %p1718_p5 = pnand %p1208_p1, %p1678_p3  ;;  %s2143_s2 = sld [smem:[#allocation20_spill]] }
  0x23   : > { %p1361_p9 = pneg %p1718_p5 }
  0x27   : > { %s1359_s15 = scalar_lea.hbm %s2143_s2, 8192 }
  0x28   : > { %p1360_p8 = scmp.ne.s32.totalorder %s2143_s2, %s1359_s15  ;;  %p1366_p13 = scmp.lt.u32.totalorder %s1359_s15, %s2143_s2 }
  0x2a   : > { %p1362_p4 = pnand %p1361_p9, %p1360_p8 }
  0x2c   : > { %p1363_p11 = pneg %p1362_p4 }
  0x2e   : > { %p1368_p1 = pnand %p1366_p13, %p1363_p11 }
  0x30   : > { %1371 = shalt.err (!%p1368_p1)
}
  0x31   : > { %s1372_s19 = scalar_lea.vmem %s1711_s16, 8192  ;;  %p1380_p3 = scmp.lt.s32.totalorder %s1711_s16, %s1711_s16 }
  0x32   : > { %p1373_p2 = scmp.ne.s32.totalorder %s1711_s16, %s1372_s19  ;;  %p1381_p8 = scmp.lt.s32.totalorder %s1372_s19, %s1372_s19 }
  0x34   : > { %p1375_p12 = pnand %p1373_p2, %p1361_p9  ;;  %p1382_p4 = por %p1381_p8, %p1380_p3 }
  0x36   : > { %p1376_p10 = pneg %p1375_p12 }
  0x38   : > { %p1383_p6 = pnand %p1382_p4, %p1376_p10 }
  0x3a   : > { %1386 = shalt.err (!%p1383_p6)
}
  0x3b   : > { %s2124_s7 = smov 128   ;;  %s2125_s9 = smov 8  }
  0x3c   : > { %1211 = dma.hbm_to_vmem [thread:$0]  (!%p1718_p5), %s2143_s2, 8192, %s1711_s16, [#allocation9], %s2124_s7, %s2124_s7, %s2125_s9  }
  0x3d   : > { %s2144_s3 = sld [smem:[#allocation21_spill]] }
  0x43   : > { %s1387_s10 = scalar_lea.hbm %s2144_s3, 1024 }
  0x44   : > { %p1388_p3 = scmp.ne.s32.totalorder %s2144_s3, %s1387_s10  ;;  %p1394_p12 = scmp.lt.u32.totalorder %s1387_s10, %s2144_s3 }
  0x46   : > { %p1390_p6 = pnand %p1388_p3, %p1361_p9 }
  0x48   : > { %p1391_p10 = pneg %p1390_p6 }
  0x4a   : > { %p1396_p11 = pnand %p1394_p12, %p1391_p10 }
  0x4c   : > { %1399 = shalt.err (!%p1396_p11)
}
  0x4d   : > { %s1400_s16 = scalar_lea.vmem %s1728_s23, 1024  ;;  %p1408_p8 = scmp.lt.s32.totalorder %s1728_s23, %s1728_s23 }
  0x4e   : > { %p1401_p13 = scmp.ne.s32.totalorder %s1728_s23, %s1400_s16  ;;  %p1409_p4 = scmp.lt.s32.totalorder %s1400_s16, %s1400_s16 }
  0x50   : > { %p1403_p1 = pnand %p1401_p13, %p1361_p9  ;;  %p1410_p3 = por %p1409_p4, %p1408_p8 }
  0x52   : > { %p1404_p2 = pneg %p1403_p1 }
  0x54   : > { %p1411_p6 = pnand %p1410_p3, %p1404_p2 }
  0x56   : > { %1414 = shalt.err (!%p1411_p6)
}
  0x57   : > { %s1577_s5 = smov 64   ;;  %s1578_s20 = smov 4  }
  0x58   : > { %1214 = dma.hbm_to_vmem [thread:$0]  (!%p1718_p5), %s2144_s3, 1024, %s1728_s23, [#allocation9], %s1577_s5, %s1577_s5, %s1578_s20  }
  0x59   : > { %s32_s30 = sadd.s32 1, %s1563_s27  ;;  %s35_s6 = sadd.s32 1, %s1567_s28 }
  0x5a   : > { %p33_p9 = scmp.ge.s32.totalorder %s32_s30, 2  ;;  %s199_s15 = sand.u32 1, %s1551_s25  }
  0x5b   : > { %s1008_s10 = sshll.u32 %s1563_s27, 1  ;;  %s1006_s17 = sshll.u32 %s199_s15, 7 }
  0x5c   : > { %s2170_s30 = smov (%p33_p9, %s32_s30), 0  ;;  %s2172_s6 = smov (!%p33_p9, %s35_s6), %s1567_s28 }
  0x5d   : > { %2145 = sst [smem:[#allocation19_spill]] %s2170_s30  ;;  %s40_s19 = ssub.s32 %s1563_s27, %s2170_s30 }
  0x5e   : > { %p37_p10 = scmp.ge.s32.totalorder %s2172_s6, 4  ;;  %s1050_s16 = sshll.u32 %s1567_s28, 6 }
  0x5f   : > { %s210_s23 = sadd.s32 %s1050_s16, %s1008_s10  ;;  %s203_s5 = scalar_lea.vmem [#allocation5], %s1006_s17 }
  0x60   : > { %s2174_s6 = smov (%p37_p10, %s2172_s6), 0  ;;  %s213_s20 = sshll.u32 %s203_s5, 4  ;;  %s1814_s20 = int_to_ptr.vmem [resolvable:$true] %s213_s20 }
  0x61   : > { %s39_s29 = ssub.s32 %s1567_s28, %s2174_s6  ;;  %s1010_s13 = sshll.u32 %s210_s23, 6 }
  0x62   : > { %s41_s7 = sor.u32 %s40_s19, %s39_s29  ;;  %p131_p5 = scmp.eq.s32.totalorder %s39_s29, 0 }
  0x63   : > { %p42_p12 = scmp.eq.s32.totalorder %s41_s7, 0  ;;  %s1802_s3 = scalar_lea.hbm %s2110_s1, %s1010_s13 }
  0x64   : > { %s2146_s30 = sadd.s32 1, %s1539_s22  ;;  %s2147_s10 = sadd.s32 1, %s1551_s25 }
  0x65   : > { %s1807_s27 = scalar_select %p131_p5, %s1539_s22, %s2146_s30  }
  0x66   : > { %s1812_s17 = scalar_select %p42_p12, %s1551_s25, %s2147_s10  }
  0x67   : > { %s1816_s19 = scalar_lea.sflag [#allocation6], %s199_s15  ;;  %s1415_s7 = scalar_lea.hbm %s1802_s3, 2048 }
  0x68   : > { %p1416_p11 = scmp.ne.s32.totalorder %s1802_s3, %s1415_s7  ;;  %p1417_p13 = pneg %p1724_p7 }
  0x69   : > { %s1420_s30 = scalar_lea.hbm %s2110_s1, 16384  ;;  %p1421_p8 = scmp.lt.u32.totalorder %s1802_s3, %s2110_s1 }
  0x6a   : > { %p1418_p1 = pnand %p1417_p13, %p1416_p11  ;;  %p1422_p4 = scmp.lt.u32.totalorder %s1420_s30, %s1415_s7 }
  0x6b   : > { %p1424_p6 = scmp.lt.u32.totalorder %s1415_s7, %s1802_s3 }
  0x6c   : > { %p1419_p2 = pneg %p1418_p1  ;;  %p1423_p3 = por %p1422_p4, %p1421_p8 }
  0x6e   : > { %p1425_p9 = por %p1424_p6, %p1423_p3 }
  0x70   : > { %p1426_p10 = pnand %p1425_p9, %p1419_p2 }
  0x72   : > { %1429 = shalt.err (!%p1426_p10)
}
  0x73   : > { %s1430_s15 = scalar_lea.vmem %s1814_s20, 2048  ;;  %s1579_s5 = smov [#allocation5]  }
  0x74   : > { %p1431_p5 = scmp.ne.s32.totalorder %s1814_s20, %s1430_s15  ;;  %s1435_s29 = sshll.u32 %s1579_s5, 4  ;;  %s1436_s29 = int_to_ptr.vmem [resolvable:$false] %s1435_s29 }
  0x75   : > { %s1437_s13 = scalar_lea.vmem %s1436_s29, 4096  ;;  %p1438_p1 = scmp.lt.s32.totalorder %s1814_s20, %s1436_s29 }
  0x76   : > { %p1433_p12 = pnand %p1431_p5, %p1417_p13  ;;  %p1439_p8 = scmp.lt.s32.totalorder %s1437_s13, %s1430_s15 }
  0x78   : > { %p1434_p11 = pneg %p1433_p12  ;;  %p1440_p4 = por %p1439_p8, %p1438_p1 }
  0x7a   : > { %p1441_p3 = pnand %p1440_p4, %p1434_p11 }
  0x7c   : > { %1444 = shalt.err (!%p1441_p3)
}
  0x7d   : > { %s1580_s10 = smov 256   ;;  %s2148_s7 = smov 8  }
  0x7e   : > { %s2149_s2 = smov 128   ;;  %225 = sbr.rel (%p1707_p0) target bundleno = 692 (0x2b4), region = 36 }
  0x7f   : > { %1218 = dma.hbm_to_vmem [thread:$0]  (!%p1724_p7), %s1802_s3, 2048, %s1814_s20, %s1816_s19, %s1580_s10, %s2149_s2, %s2148_s7  }
  0x80   : > { %s227_s9 = sand.u32 (!%p1707_p0), 1, %s1547_s24   ;;  %p2150_p13 = scmp.ne.s32.totalorder (!%p1707_p0), %s2136_s11, 0 }
  0x81   : > { %s1012_s30 = sshll.u32 (!%p1707_p0), %s227_s9, 7  ;;  %s228_s16 = scalar_lea.sflag (!%p1707_p0), [#allocation6], %s227_s9 }
  0x82   : > { %s1849_s23 = scalar_lea.vmem (!%p1707_p0), [#allocation5], %s1012_s30 }
  0x85   : > { %1518 = dma.done.wait (%p2150_p13), %s228_s16, 2048  }
  0x86   : > { %1520 = vsyncadd (%p2150_p13), %s228_s16, 4294965248  ;;  %p2151_p2 = scmp.ne.s32.totalorder %s2134_s8, 0 }
  0x88   : > { %1522 = dma.done.wait (%p2151_p2), [#allocation9], 9216  }
  0x89   : > { %1524 = vsyncadd (%p2151_p2), [#allocation9], 4294958080  ;;  %s261_s3 = sand.u32 1, %s1535_s21   ;;  %p1016_p0 = scmp.ne.s32.totalorder %s1555_s26, 0 }
  0x8a   : > { %s1015_s14 = sshll.u32 %s261_s3, 7  ;;  %v1581_v0 = vmov (!%p1016_p0), 0.0  }
  0x8b   : > { %s1862_s18 = scalar_lea.vmem [#allocation11], %s1015_s14  ;;  %271 = sbr.rel (%p1016_p0) target bundleno = 147 (0x93), region = 52  ;;  %272 = vst [vmem:[#allocation2] sm:$0xff] (!%p1016_p0), %v1581_v0  ;;  %273 = vst [vmem:[#allocation2 + $0x8] sm:$0xff] (!%p1016_p0), %v1581_v0 }
  0x8c   : > { %274 = vst [vmem:[#allocation2 + $0x10] sm:$0xff] (!%p1016_p0), %v1581_v0  ;;  %275 = vst [vmem:[#allocation2 + $0x18] sm:$0xff] (!%p1016_p0), %v1581_v0 }
  0x8d   : > { %276 = vst [vmem:[#allocation2 + $0x20] sm:$0xff] (!%p1016_p0), %v1581_v0  ;;  %277 = vst [vmem:[#allocation2 + $0x28] sm:$0xff] (!%p1016_p0), %v1581_v0 }
  0x8e   : > { %278 = vst [vmem:[#allocation2 + $0x30] sm:$0xff] (!%p1016_p0), %v1581_v0  ;;  %279 = vst [vmem:[#allocation2 + $0x38] sm:$0xff] (!%p1016_p0), %v1581_v0 }
  0x8f   : > { %280 = vst [vmem:[#allocation2 + $0x40] sm:$0xff] (!%p1016_p0), %v1581_v0  ;;  %281 = vst [vmem:[#allocation2 + $0x48] sm:$0xff] (!%p1016_p0), %v1581_v0 }
  0x90   : > { %282 = vst [vmem:[#allocation2 + $0x50] sm:$0xff] (!%p1016_p0), %v1581_v0  ;;  %283 = vst [vmem:[#allocation2 + $0x58] sm:$0xff] (!%p1016_p0), %v1581_v0 }
  0x91   : > { %284 = vst [vmem:[#allocation2 + $0x60] sm:$0xff] (!%p1016_p0), %v1581_v0  ;;  %285 = vst [vmem:[#allocation2 + $0x68] sm:$0xff] (!%p1016_p0), %v1581_v0 }
  0x92   : > { %286 = vst [vmem:[#allocation2 + $0x70] sm:$0xff] %v1581_v0  ;;  %287 = vst [vmem:[#allocation2 + $0x78] sm:$0xff] %v1581_v0 }
  0x93 PF: > { %s1017_s8 = sshll.u32 %s1555_s26, 8  ;;  %v1329_v1 = vld [vmem:[%s1849_s23 + $0x4] ss:$8 sps:$4 sm:$0xff]   ;;  %v1327_v51 = vld [vmem:[%s1849_s23] ss:$8 sps:$4 sm:$0xff]   ;;  %p1034_p7 = scmp.ne.s32.totalorder %s1555_s26, 1 }
  0x94   : > { %s1867_s11 = scalar_lea.vmem [#allocation8], %s1017_s8  ;;  %482 = vmatprep.mubr.bf16.mxu0 %v1329_v1  ;;  %v1332_v27 = vld [vmem:[%s1849_s23 + $0x44] ss:$8 sps:$4 sm:$0xff]   ;;  %v1330_v52 = vld [vmem:[%s1849_s23 + $0x40] ss:$8 sps:$4 sm:$0xff]   ;;  %s1035_s20 = sshll.u32 (!%p1034_p7), %s1559_s0, 7 }
  0x95   : > { %v306_v2 = vld [vmem:[%s1867_s11 + $0x80] sm:$0xff]  ;;  %v307_v3 = vld [vmem:[%s1867_s11 + $0x88] sm:$0xff]  ;;  %v308_v7 = vld [vmem:[%s1867_s11 + $0x90] sm:$0xff]  ;;  %514 = vmatprep.mubr.bf16.mxu1 %v1332_v27  ;;  %s601_s19 = sld [smem:[#allocation4]] (!%p1034_p7)  ;;  %s1918_s26 = scalar_lea.vmem (!%p1034_p7), [#allocation8], %s1035_s20 }
  0x96   : > { %v290_v4 = vld [vmem:[%s1867_s11] sm:$0xff]  ;;  %v330_v5 = vpack.c.bf16 %v307_v3, %v306_v2  ;;  %v291_v6 = vld [vmem:[%s1867_s11 + $0x8] sm:$0xff]  ;;  %v309_v8 = vld [vmem:[%s1867_s11 + $0x98] sm:$0xff] }
  0x97   : > { %v322_v9 = vpack.c.bf16 %v291_v6, %v290_v4  ;;  %v331_v10 = vpack.c.bf16 %v309_v8, %v308_v7  ;;  %v292_v11 = vld [vmem:[%s1867_s11 + $0x10] sm:$0xff]  ;;  %v293_v12 = vld [vmem:[%s1867_s11 + $0x18] sm:$0xff]  ;;  %v310_v13 = vld [vmem:[%s1867_s11 + $0xa0] sm:$0xff] }
  0x98   : > { %1052 = vmatprep.subr.bf16.mxu0 %v330_v5  ;;  %1164 = vmatprep.subr.bf16.mxu1 %v330_v5  ;;  %v311_v14 = vld [vmem:[%s1867_s11 + $0xa8] sm:$0xff]  ;;  %v323_v15 = vpack.c.bf16 %v293_v12, %v292_v11  ;;  %v294_v17 = vld [vmem:[%s1867_s11 + $0x20] sm:$0xff]  ;;  %v312_v19 = vld [vmem:[%s1867_s11 + $0xb0] sm:$0xff] }
  0x99   : > { %1053 = vmatpush3.bf16.msra.mxu0 %v322_v9  ;;  %1172 = vmatpush3.bf16.msra.mxu1 %v322_v9  ;;  %v332_v16 = vpack.c.bf16 %v311_v14, %v310_v13  ;;  %v295_v18 = vld [vmem:[%s1867_s11 + $0x28] sm:$0xff]  ;;  %v313_v20 = vld [vmem:[%s1867_s11 + $0xb8] sm:$0xff]  ;;  %v296_v23 = vld [vmem:[%s1867_s11 + $0x30] sm:$0xff] }
  0x9a   : > { %1054 = vmatprep.subr.bf16.mxu0 %v331_v10  ;;  %1165 = vmatprep.subr.bf16.mxu1 %v331_v10  ;;  %v324_v21 = vpack.c.bf16 %v295_v18, %v294_v17  ;;  %v333_v22 = vpack.c.bf16 %v313_v20, %v312_v19  ;;  %v297_v24 = vld [vmem:[%s1867_s11 + $0x38] sm:$0xff]  ;;  %v314_v25 = vld [vmem:[%s1867_s11 + $0xc0] sm:$0xff]  ;;  %v315_v26 = vld [vmem:[%s1867_s11 + $0xc8] sm:$0xff] }
  0x9b   : > { %v325_v28 = vpack.c.bf16 %v297_v24, %v296_v23  ;;  %v334_v29 = vpack.c.bf16 %v315_v26, %v314_v25  ;;  %v298_v30 = vld [vmem:[%s1867_s11 + $0x40] sm:$0xff]  ;;  %v299_v31 = vld [vmem:[%s1867_s11 + $0x48] sm:$0xff]  ;;  %v316_v32 = vld [vmem:[%s1867_s11 + $0xd0] sm:$0xff]  ;;  %s602_s15 = sadd.f32 (!%p1034_p7), 1.0, %s601_s19 }
  0x9c   : > { %v317_v33 = vld [vmem:[%s1867_s11 + $0xd8] sm:$0xff]  ;;  %v326_v34 = vpack.c.bf16 %v299_v31, %v298_v30  ;;  %v300_v35 = vld [vmem:[%s1867_s11 + $0x50] sm:$0xff]  ;;  %v318_v38 = vld [vmem:[%s1867_s11 + $0xe0] sm:$0xff] }
  0x9d   : > { %1055 = vmatpush3.bf16.msra.mxu0 %v323_v15  ;;  %1173 = vmatpush3.bf16.msra.mxu1 %v323_v15  ;;  %v335_v36 = vpack.c.bf16 %v317_v33, %v316_v32  ;;  %v301_v37 = vld [vmem:[%s1867_s11 + $0x58] sm:$0xff]  ;;  %v319_v39 = vld [vmem:[%s1867_s11 + $0xe8] sm:$0xff]  ;;  %v302_v42 = vld [vmem:[%s1867_s11 + $0x60] sm:$0xff] }
  0x9e   : > { %1056 = vmatprep.subr.bf16.mxu0 %v332_v16  ;;  %1166 = vmatprep.subr.bf16.mxu1 %v332_v16  ;;  %v327_v40 = vpack.c.bf16 %v301_v37, %v300_v35  ;;  %v336_v41 = vpack.c.bf16 %v319_v39, %v318_v38  ;;  %v303_v43 = vld [vmem:[%s1867_s11 + $0x68] sm:$0xff]  ;;  %v320_v44 = vld [vmem:[%s1867_s11 + $0xf0] sm:$0xff]  ;;  %v321_v45 = vld [vmem:[%s1867_s11 + $0xf8] sm:$0xff] }
  0x9f   : > { %v328_v46 = vpack.c.bf16 %v303_v43, %v302_v42  ;;  %v337_v47 = vpack.c.bf16 %v321_v45, %v320_v44  ;;  %v304_v48 = vld [vmem:[%s1867_s11 + $0x70] sm:$0xff]  ;;  %v305_v49 = vld [vmem:[%s1867_s11 + $0x78] sm:$0xff]  ;;  %v1339_v57 = vld [vmem:[%s1849_s23 + $0x24] ss:$8 sps:$4 sm:$0xff]  }
  0xa0   : > { %v329_v50 = vpack.c.bf16 %v305_v49, %v304_v48  ;;  %v1333_v53 = vld [vmem:[%s1849_s23 + $0x14] ss:$8 sps:$4 sm:$0xff]   ;;  %v1337_v55 = vld [vmem:[%s1849_s23 + $0x10] ss:$8 sps:$4 sm:$0xff]   ;;  %v1341_v58 = vld [vmem:[%s1849_s23 + $0x64] ss:$8 sps:$4 sm:$0xff]  }
  0xa1   : > { %1057 = vmatpush3.bf16.msra.mxu0 %v324_v21  ;;  %1174 = vmatpush3.bf16.msra.mxu1 %v324_v21  ;;  %v1335_v54 = vld [vmem:[%s1849_s23 + $0x54] ss:$8 sps:$4 sm:$0xff]   ;;  %v1338_v56 = vld [vmem:[%s1849_s23 + $0x50] ss:$8 sps:$4 sm:$0xff]   ;;  %v1343_v59 = vld [vmem:[%s1849_s23 + $0x20] ss:$8 sps:$4 sm:$0xff]  }
  0xa2   : > { %1058 = vmatprep.subr.bf16.mxu0 %v333_v22  ;;  %1167 = vmatprep.subr.bf16.mxu1 %v333_v22  ;;  %v1344_v60 = vld [vmem:[%s1849_s23 + $0x60] ss:$8 sps:$4 sm:$0xff]   ;;  %v1345_v61 = vld [vmem:[%s1849_s23 + $0x34] ss:$8 sps:$4 sm:$0xff]   ;;  %v1349_v63 = vld [vmem:[%s1849_s23 + $0x30] ss:$8 sps:$4 sm:$0xff]  }
  0xa3   : > { %v1347_v62 = vld [vmem:[%s1849_s23 + $0x74] ss:$8 sps:$4 sm:$0xff]   ;;  %v1350_v0 = vld [vmem:[%s1849_s23 + $0x70] ss:$8 sps:$4 sm:$0xff]   ;;  %v338_v3 = vld [vmem:[#allocation2] sm:$0xff] }
  0xa4   : > { %v346_v5 = vld [vmem:[#allocation2 + $0x40] sm:$0xff]  ;;  %v339_v11 = vld [vmem:[#allocation2 + $0x8] sm:$0xff]  ;;  %v340_v23 = vld [vmem:[#allocation2 + $0x10] sm:$0xff] }
  0xa5   : > { %1059 = vmatpush3.bf16.msra.mxu0 %v325_v28  ;;  %1175 = vmatpush3.bf16.msra.mxu1 %v325_v28  ;;  %v347_v13 = vld [vmem:[#allocation2 + $0x48] sm:$0xff]  ;;  %v348_v25 = vld [vmem:[#allocation2 + $0x50] sm:$0xff]  ;;  %v341_v31 = vld [vmem:[#allocation2 + $0x18] sm:$0xff] }
  0xa6   : > { %1060 = vmatprep.subr.bf16.mxu0 %v334_v29  ;;  %1168 = vmatprep.subr.bf16.mxu1 %v334_v29  ;;  %v349_v33 = vld [vmem:[#allocation2 + $0x58] sm:$0xff]  ;;  %v342_v43 = vld [vmem:[#allocation2 + $0x20] sm:$0xff] }
  0xa7   : > { %v350_v45 = vld [vmem:[#allocation2 + $0x60] sm:$0xff] }
  0xa9   : > { %1061 = vmatpush3.bf16.msra.mxu0 %v326_v34  ;;  %1176 = vmatpush3.bf16.msra.mxu1 %v326_v34 }
  0xaa   : > { %1062 = vmatprep.subr.bf16.mxu0 %v335_v36  ;;  %1169 = vmatprep.subr.bf16.mxu1 %v335_v36 }
  0xad   : > { %1063 = vmatpush3.bf16.msra.mxu0 %v327_v40  ;;  %1177 = vmatpush3.bf16.msra.mxu1 %v327_v40 }
  0xae   : > { %1064 = vmatprep.subr.bf16.mxu0 %v336_v41  ;;  %1170 = vmatprep.subr.bf16.mxu1 %v336_v41 }
  0xb1   : > { %1065 = vmatpush3.bf16.msra.mxu0 %v328_v46  ;;  %1178 = vmatpush3.bf16.msra.mxu1 %v328_v46 }
  0xb2   : > { %1066 = vmatprep.subr.bf16.mxu0 %v337_v47  ;;  %1171 = vmatprep.subr.bf16.mxu1 %v337_v47 }
  0xb5   : > { %1067 = vmatpush3.bf16.msra.mxu0 %v329_v50  ;;  %1179 = vmatpush3.bf16.msra.mxu1 %v329_v50 }
  0xb8   : > { %483 = vmatmul.mubr.bf16.vlgmr.msra.gmra.mrb[0].mxu0 %v1327_v51  ;;  %515 = vmatmul.mubr.bf16.vlgmr.msra.gmra.mrb[0].mxu1 %v1330_v52  ;;  %v343_v51 = vld [vmem:[#allocation2 + $0x28] sm:$0xff] }
  0xb9   : > { %490 = vmatprep.mubr.bf16.mxu0 %v1333_v53  ;;  %522 = vmatprep.mubr.bf16.mxu1 %v1335_v54  ;;  %v351_v53 = vld [vmem:[#allocation2 + $0x68] sm:$0xff] }
  0xc0   : > { %491 = vmatmul.mubr.bf16.gmra.mrb[4].mxu0 %v1337_v55  ;;  %523 = vmatmul.mubr.bf16.gmra.mrb[4].mxu1 %v1338_v56 }
  0xc1   : > { %498 = vmatprep.mubr.bf16.mxu0 %v1339_v57  ;;  %530 = vmatprep.mubr.bf16.mxu1 %v1341_v58 }
  0xc8   : > { %499 = vmatmul.mubr.bf16.gmra.mrb[8].mxu0 %v1343_v59  ;;  %531 = vmatmul.mubr.bf16.gmra.mrb[8].mxu1 %v1344_v60 }
  0xc9   : > { %506 = vmatprep.mubr.bf16.mxu0 %v1345_v61  ;;  %538 = vmatprep.mubr.bf16.mxu1 %v1347_v62 }
  0xd0   : > { %507 = vmatmul.mubr.bf16.gmra.mrb[12].mxu0 %v1349_v63  ;;  %539 = vmatmul.mubr.bf16.gmra.mrb[12].mxu1 %v1350_v0  ;;  %v344_v63 = vld [vmem:[#allocation2 + $0x30] sm:$0xff] }
 0x18b   : > { %v1068_v1 = vpop.f32.mrb[0].mxu0  ;;  %v1092_v2 = vpop.f32.mrb[0].mxu1 }
 0x18c   : > { %v1069_v4 = vpop.f32.mrb[1].mxu0  ;;  %v1093_v6 = vpop.f32.mrb[1].mxu1 }
 0x18d   : > { %v1070_v7 = vadd.f32 %v1069_v4, %v1068_v1  ;;  %v1094_v8 = vadd.f32 %v1093_v6, %v1092_v2  ;;  %v1071_v9 = vpop.f32.mrb[2].mxu0  ;;  %v1095_v10 = vpop.f32.mrb[2].mxu1  ;;  %v352_v1 = vld [vmem:[#allocation2 + $0x70] sm:$0xff] }
 0x18e   : > { %v1072_v12 = vpop.f32.mrb[3].mxu0  ;;  %v1096_v14 = vpop.f32.mrb[3].mxu1 }
 0x18f   : > { %v547_v15 = vadd.f32 %v1070_v7, %v338_v3  ;;  %v555_v16 = vadd.f32 %v1094_v8, %v346_v5  ;;  %v1073_v17 = vadd.f32 %v1072_v12, %v1071_v9  ;;  %v1097_v18 = vadd.f32 %v1096_v14, %v1095_v10  ;;  %v345_v7 = vld [vmem:[#allocation2 + $0x38] sm:$0xff] }
 0x190   : > { %v353_v9 = vld [vmem:[#allocation2 + $0x78] sm:$0xff] }
 0x191   : > { %563 = vst [vmem:[#allocation2] sm:$0xff] %v547_v15  ;;  %571 = vst [vmem:[#allocation2 + $0x40] sm:$0xff] %v555_v16  ;;  %v548_v19 = vadd.f32 %v1073_v17, %v339_v11  ;;  %v556_v20 = vadd.f32 %v1097_v18, %v347_v13  ;;  %v1351_v17 = vld [vmem:[#allocation10] sm:$0xff] (!%p1034_p7)   ;;  %v1352_v18 = vld [vmem:[#allocation10 + $0x8] sm:$0xff] (!%p1034_p7)  }
 0x192   : > { %1132 = vmatprep.subr.bf16.mxu0 (!%p1034_p7), %v1351_v17  ;;  %1180 = vmatprep.subr.bf16.mxu1 (!%p1034_p7), %v1351_v17 }
 0x193   : > { %564 = vst [vmem:[#allocation2 + $0x8] sm:$0xff] %v548_v19  ;;  %572 = vst [vmem:[#allocation2 + $0x48] sm:$0xff] %v556_v20  ;;  %v1074_v21 = vpop.f32.mrb[4].mxu0  ;;  %v1098_v22 = vpop.f32.mrb[4].mxu1  ;;  %1133 = vmatpush3.bf16.msra.mxu0 (!%p1034_p7), %v1351_v17  ;;  %1188 = vmatpush3.bf16.msra.mxu1 (!%p1034_p7), %v1351_v17  ;;  %v1353_v19 = vld [vmem:[#allocation10 + $0x10] sm:$0xff] (!%p1034_p7)   ;;  %v1354_v20 = vld [vmem:[#allocation10 + $0x18] sm:$0xff] (!%p1034_p7)  }
 0x194   : > { %v1075_v24 = vpop.f32.mrb[5].mxu0  ;;  %v1099_v26 = vpop.f32.mrb[5].mxu1  ;;  %1134 = vmatprep.subr.bf16.mxu0 (!%p1034_p7), %v1352_v18  ;;  %1181 = vmatprep.subr.bf16.mxu1 (!%p1034_p7), %v1352_v18 }
 0x195   : > { %v1076_v27 = vadd.f32 %v1075_v24, %v1074_v21  ;;  %v1100_v28 = vadd.f32 %v1099_v26, %v1098_v22  ;;  %v1077_v29 = vpop.f32.mrb[6].mxu0  ;;  %v1101_v30 = vpop.f32.mrb[6].mxu1  ;;  %v1355_v21 = vld [vmem:[#allocation10 + $0x20] sm:$0xff] (!%p1034_p7)   ;;  %v1356_v26 = vld [vmem:[#allocation10 + $0x28] sm:$0xff] (!%p1034_p7)  }
 0x196   : > { %v1078_v32 = vpop.f32.mrb[7].mxu0  ;;  %v1102_v34 = vpop.f32.mrb[7].mxu1  ;;  %v1921_v22 = vld [vmem:[%s1918_s26] sm:$0xff] (!%p1034_p7) }
 0x197   : > { %v549_v35 = vadd.f32 %v1076_v27, %v340_v23  ;;  %v557_v36 = vadd.f32 %v1100_v28, %v348_v25  ;;  %v1079_v37 = vadd.f32 %v1078_v32, %v1077_v29  ;;  %v1103_v38 = vadd.f32 %v1102_v34, %v1101_v30  ;;  %1135 = vmatpush3.bf16.msra.mxu0 (!%p1034_p7), %v1352_v18  ;;  %v1924_v23 = vld [vmem:[%s1918_s26 + $0x8] sm:$0xff] (!%p1034_p7)  ;;  %v1927_v24 = vld [vmem:[%s1918_s26 + $0x40] sm:$0xff] (!%p1034_p7) }
 0x198   : > { %1189 = vmatpush3.bf16.msra.mxu1 (!%p1034_p7), %v1352_v18  ;;  %1136 = vmatprep.subr.bf16.mxu0 (!%p1034_p7), %v1353_v19  ;;  %v1930_v25 = vld [vmem:[%s1918_s26 + $0x48] sm:$0xff] (!%p1034_p7)  ;;  %v1932_v27 = vstv (!%p1034_p7), %s602_s15  ;;  %v620_v28 = vld [vmem:[#allocation2] sm:$0xff] (!%p1034_p7) }
 0x199   : > { %565 = vst [vmem:[#allocation2 + $0x10] sm:$0xff] %v549_v35  ;;  %573 = vst [vmem:[#allocation2 + $0x50] sm:$0xff] %v557_v36  ;;  %v550_v39 = vadd.f32 %v1079_v37, %v341_v31  ;;  %v558_v40 = vadd.f32 %v1103_v38, %v349_v33  ;;  %1182 = vmatprep.subr.bf16.mxu1 (!%p1034_p7), %v1353_v19  ;;  %v628_v30 = vld [vmem:[#allocation2 + $0x40] sm:$0xff] (!%p1034_p7)  ;;  %v604_v31 = vmul.f32 (!%p1034_p7), %v1932_v27, %v1921_v22  ;;  %v1357_v36 = vld [vmem:[#allocation10 + $0x30] sm:$0xff] (!%p1034_p7)  }
 0x19a   : > { %v621_v29 = vld [vmem:[#allocation2 + $0x8] sm:$0xff] (!%p1034_p7)  ;;  %v605_v32 = vmul.f32 (!%p1034_p7), %v1932_v27, %v1924_v23  ;;  %v612_v33 = vmul.f32 (!%p1034_p7), %v1932_v27, %v1927_v24  ;;  %v613_v34 = vmul.f32 (!%p1034_p7), %v1932_v27, %v1930_v25  ;;  %v1943_v37 = vld [vmem:[%s1918_s26 + $0x10] sm:$0xff] (!%p1034_p7)  ;;  %v1946_v38 = vld [vmem:[%s1918_s26 + $0x18] sm:$0xff] (!%p1034_p7) }
 0x19b   : > { %566 = vst [vmem:[#allocation2 + $0x18] sm:$0xff] %v550_v39  ;;  %574 = vst [vmem:[#allocation2 + $0x58] sm:$0xff] %v558_v40  ;;  %v1080_v41 = vpop.f32.mrb[8].mxu0  ;;  %v1104_v42 = vpop.f32.mrb[8].mxu1  ;;  %1137 = vmatpush3.bf16.msra.mxu0 (!%p1034_p7), %v1353_v19  ;;  %v629_v35 = vld [vmem:[#allocation2 + $0x48] sm:$0xff] (!%p1034_p7)  ;;  %v636_v39 = vadd.f32 (!%p1034_p7), %v620_v28, %v604_v31 }
 0x19c   : > { %v1081_v44 = vpop.f32.mrb[9].mxu0  ;;  %v1105_v46 = vpop.f32.mrb[9].mxu1  ;;  %1190 = vmatpush3.bf16.msra.mxu1 (!%p1034_p7), %v1353_v19  ;;  %1138 = vmatprep.subr.bf16.mxu0 (!%p1034_p7), %v1354_v20  ;;  %v637_v40 = vadd.f32 (!%p1034_p7), %v621_v29, %v605_v32 }
 0x19d   : > { %v1082_v47 = vadd.f32 %v1081_v44, %v1080_v41  ;;  %v1106_v48 = vadd.f32 %v1105_v46, %v1104_v42  ;;  %v1083_v49 = vpop.f32.mrb[10].mxu0  ;;  %v1107_v50 = vpop.f32.mrb[10].mxu1  ;;  %1183 = vmatprep.subr.bf16.mxu1 (!%p1034_p7), %v1354_v20  ;;  %v644_v41 = vadd.f32 (!%p1034_p7), %v628_v30, %v612_v33  ;;  %v1949_v42 = vld [vmem:[%s1918_s26 + $0x50] sm:$0xff] (!%p1034_p7)  ;;  %v1955_v44 = vld [vmem:[%s1918_s26 + $0x20] sm:$0xff] (!%p1034_p7)  ;;  %v1958_v46 = vld [vmem:[%s1918_s26 + $0x28] sm:$0xff] (!%p1034_p7) }
 0x19e   : > { %v1084_v52 = vpop.f32.mrb[11].mxu0  ;;  %v1108_v54 = vpop.f32.mrb[11].mxu1 }
 0x19f   : > { %v551_v55 = vadd.f32 %v1082_v47, %v342_v43  ;;  %v559_v56 = vadd.f32 %v1106_v48, %v350_v45  ;;  %v1085_v57 = vadd.f32 %v1084_v52, %v1083_v49  ;;  %v1109_v58 = vadd.f32 %v1108_v54, %v1107_v50  ;;  %1139 = vmatpush3.bf16.msra.mxu0 (!%p1034_p7), %v1354_v20  ;;  %v1952_v43 = vld [vmem:[%s1918_s26 + $0x58] sm:$0xff] (!%p1034_p7)  ;;  %v1961_v47 = vld [vmem:[%s1918_s26 + $0x60] sm:$0xff] (!%p1034_p7)  ;;  %v1964_v48 = vld [vmem:[%s1918_s26 + $0x68] sm:$0xff] (!%p1034_p7) }
 0x1a0   : > { %1191 = vmatpush3.bf16.msra.mxu1 (!%p1034_p7), %v1354_v20  ;;  %1140 = vmatprep.subr.bf16.mxu0 (!%p1034_p7), %v1355_v21  ;;  %v645_v45 = vadd.f32 (!%p1034_p7), %v629_v35, %v613_v34  ;;  %v652_v49 = vpack.c.bf16 (!%p1034_p7), %v637_v40, %v636_v39  ;;  %v606_v50 = vmul.f32 (!%p1034_p7), %v1932_v27, %v1943_v37  ;;  %v1358_v52 = vld [vmem:[#allocation10 + $0x38] sm:$0xff] (!%p1034_p7)   ;;  %v622_v54 = vld [vmem:[#allocation2 + $0x10] sm:$0xff] (!%p1034_p7) }
 0x1a1   : > { %567 = vst [vmem:[#allocation2 + $0x20] sm:$0xff] %v551_v55  ;;  %575 = vst [vmem:[#allocation2 + $0x60] sm:$0xff] %v559_v56  ;;  %v552_v59 = vadd.f32 %v1085_v57, %v343_v51  ;;  %v560_v60 = vadd.f32 %v1109_v58, %v351_v53  ;;  %1184 = vmatprep.subr.bf16.mxu1 (!%p1034_p7), %v1355_v21  ;;  %v607_v51 = vmul.f32 (!%p1034_p7), %v1932_v27, %v1946_v38 }
 0x1a2   : > { %v656_v53 = vpack.c.bf16 (!%p1034_p7), %v645_v45, %v644_v41  ;;  %v623_v55 = vld [vmem:[#allocation2 + $0x18] sm:$0xff] (!%p1034_p7)  ;;  %v614_v56 = vmul.f32 (!%p1034_p7), %v1932_v27, %v1949_v42  ;;  %v615_v57 = vmul.f32 (!%p1034_p7), %v1932_v27, %v1952_v43  ;;  %v608_v58 = vmul.f32 (!%p1034_p7), %v1932_v27, %v1955_v44  ;;  %1148 = vmatprep.mubr.bf16.mxu0 (!%p1034_p7), %v652_v49 }
 0x1a3   : > { %568 = vst [vmem:[#allocation2 + $0x28] sm:$0xff] %v552_v59  ;;  %576 = vst [vmem:[#allocation2 + $0x68] sm:$0xff] %v560_v60  ;;  %v1086_v61 = vpop.f32.mrb[12].mxu0  ;;  %v1110_v62 = vpop.f32.mrb[12].mxu1  ;;  %1141 = vmatpush3.bf16.msra.mxu0 (!%p1034_p7), %v1355_v21  ;;  %v630_v59 = vld [vmem:[#allocation2 + $0x50] sm:$0xff] (!%p1034_p7)  ;;  %v631_v60 = vld [vmem:[#allocation2 + $0x58] sm:$0xff] (!%p1034_p7) }
 0x1a4   : > { %v1087_v0 = vpop.f32.mrb[13].mxu0  ;;  %v1111_v2 = vpop.f32.mrb[13].mxu1  ;;  %1192 = vmatpush3.bf16.msra.mxu1 (!%p1034_p7), %v1355_v21  ;;  %1142 = vmatprep.subr.bf16.mxu0 (!%p1034_p7), %v1356_v26 }
 0x1a5   : > { %v1088_v3 = vadd.f32 %v1087_v0, %v1086_v61  ;;  %v1112_v4 = vadd.f32 %v1111_v2, %v1110_v62  ;;  %v1089_v5 = vpop.f32.mrb[14].mxu0  ;;  %v1113_v6 = vpop.f32.mrb[14].mxu1  ;;  %582 = sbr.rel (%p1034_p7) target bundleno = 665 (0x299), region = 56  ;;  %1185 = vmatprep.subr.bf16.mxu1 (!%p1034_p7), %v1356_v26  ;;  %v609_v61 = vmul.f32 (!%p1034_p7), %v1932_v27, %v1958_v46  ;;  %v617_v0 = vmul.f32 (!%p1034_p7), %v1932_v27, %v1964_v48 }
 0x1a6   : > { %v1090_v8 = vpop.f32.mrb[15].mxu0  ;;  %v1114_v10 = vpop.f32.mrb[15].mxu1  ;;  %1156 = vmatprep.mubr.bf16.mxu1 (!%p1034_p7), %v656_v53 }
 0x1a7   : > { %v553_v11 = vadd.f32 %v1088_v3, %v344_v63  ;;  %v561_v12 = vadd.f32 %v1112_v4, %v352_v1  ;;  %v1091_v13 = vadd.f32 %v1090_v8, %v1089_v5  ;;  %v1115_v14 = vadd.f32 %v1114_v10, %v1113_v6  ;;  %1143 = vmatpush3.bf16.msra.mxu0 (!%p1034_p7), %v1356_v26 }
 0x1a8   : > { %1193 = vmatpush3.bf16.msra.mxu1 (!%p1034_p7), %v1356_v26  ;;  %v624_v62 = vld [vmem:[#allocation2 + $0x20] sm:$0xff] (!%p1034_p7)  ;;  %v616_v63 = vmul.f32 (!%p1034_p7), %v1932_v27, %v1961_v47  ;;  %1144 = vmatprep.subr.bf16.mxu0 (!%p1034_p7), %v1357_v36  ;;  %v638_v4 = vadd.f32 (!%p1034_p7), %v622_v54, %v606_v50  ;;  %v639_v5 = vadd.f32 (!%p1034_p7), %v623_v55, %v607_v51 }
 0x1a9   : > { %569 = vst [vmem:[#allocation2 + $0x30] sm:$0xff] %v553_v11  ;;  %577 = vst [vmem:[#allocation2 + $0x70] sm:$0xff] %v561_v12  ;;  %v554_v15 = vadd.f32 %v1091_v13, %v345_v7  ;;  %v562_v16 = vadd.f32 %v1115_v14, %v353_v9  ;;  %1186 = vmatprep.subr.bf16.mxu1 (!%p1034_p7), %v1357_v36  ;;  %v632_v2 = vld [vmem:[#allocation2 + $0x60] sm:$0xff] (!%p1034_p7)  ;;  %v646_v6 = vadd.f32 (!%p1034_p7), %v630_v59, %v614_v56  ;;  %v1983_v9 = vld [vmem:[%s1918_s26 + $0x30] sm:$0xff] (!%p1034_p7) }
 0x1aa   : > { %v625_v1 = vld [vmem:[#allocation2 + $0x28] sm:$0xff] (!%p1034_p7)  ;;  %v647_v7 = vadd.f32 (!%p1034_p7), %v631_v60, %v615_v57  ;;  %v640_v8 = vadd.f32 (!%p1034_p7), %v624_v62, %v608_v58  ;;  %v648_v11 = vadd.f32 (!%p1034_p7), %v632_v2, %v616_v63  ;;  %v1986_v13 = vld [vmem:[%s1918_s26 + $0x38] sm:$0xff] (!%p1034_p7)  ;;  %v1989_v14 = vld [vmem:[%s1918_s26 + $0x70] sm:$0xff] (!%p1034_p7)  ;;  %v610_v17 = vmul.f32 (!%p1034_p7), %v1932_v27, %v1983_v9 }
 0x1ab   : > { %570 = vst [vmem:[#allocation2 + $0x38] sm:$0xff] %v554_v15  ;;  %578 = vst [vmem:[#allocation2 + $0x78] sm:$0xff] %v562_v16  ;;  %v633_v3 = vld [vmem:[#allocation2 + $0x68] sm:$0xff] (!%p1034_p7)  ;;  %1145 = vmatpush3.bf16.msra.mxu0 (!%p1034_p7), %v1357_v36  ;;  %v641_v10 = vadd.f32 (!%p1034_p7), %v625_v1, %v609_v61  ;;  %v1992_v15 = vld [vmem:[%s1918_s26 + $0x78] sm:$0xff] (!%p1034_p7)  ;;  %v653_v16 = vpack.c.bf16 (!%p1034_p7), %v639_v5, %v638_v4  ;;  %v611_v19 = vmul.f32 (!%p1034_p7), %v1932_v27, %v1986_v13 }
 0x1ac   : > { %1194 = vmatpush3.bf16.msra.mxu1 %v1357_v36  ;;  %v649_v12 = vadd.f32 %v633_v3, %v617_v0  ;;  %1146 = vmatprep.subr.bf16.mxu0 %v1358_v52  ;;  %v657_v18 = vpack.c.bf16 %v647_v7, %v646_v6  ;;  %v618_v21 = vmul.f32 %v1932_v27, %v1989_v14 }
 0x1ad   : > { %1187 = vmatprep.subr.bf16.mxu1 %v1358_v52  ;;  %v619_v26 = vmul.f32 %v1932_v27, %v1992_v15  ;;  %v654_v28 = vpack.c.bf16 %v641_v10, %v640_v8  ;;  %v1036_v27 = vld [vmem:[%s2113_s4] ss:$0 sm:$0xff] }
 0x1ae   : > { %v658_v29 = vpack.c.bf16 %v649_v12, %v648_v11 }
 0x1af   : > { %1147 = vmatpush3.bf16.msra.mxu0 %v1358_v52 }
 0x1b0   : > { %v626_v20 = vld [vmem:[#allocation2 + $0x30] sm:$0xff]  ;;  %1195 = vmatpush3.bf16.msra.mxu1 %v1358_v52 }
 0x1b1   : > { %v634_v31 = vld [vmem:[#allocation2 + $0x70] sm:$0xff]  ;;  %v642_v33 = vadd.f32 %v626_v20, %v610_v17 }
 0x1b2   : > { %v627_v30 = vld [vmem:[#allocation2 + $0x38] sm:$0xff]  ;;  %1149 = vmatmul.mubr.bf16.vlgmr.msra.gmra.mrb[0].mxu0 %v653_v16  ;;  %v650_v35 = vadd.f32 %v634_v31, %v618_v21 }
 0x1b3   : > { %v635_v32 = vld [vmem:[#allocation2 + $0x78] sm:$0xff]  ;;  %1157 = vmatmul.mubr.bf16.vlgmr.msra.gmra.mrb[0].mxu1 %v657_v18  ;;  %v643_v34 = vadd.f32 %v627_v30, %v611_v19  ;;  %1152 = vmatprep.mubr.bf16.mxu0 %v654_v28 }
 0x1b4   : > { %v651_v36 = vadd.f32 %v635_v32, %v619_v26  ;;  %1160 = vmatprep.mubr.bf16.mxu1 %v658_v29 }
 0x1b5   : > { %v655_v39 = vpack.c.bf16 %v643_v34, %v642_v33 }
 0x1b6   : > { %v659_v40 = vpack.c.bf16 %v651_v36, %v650_v35 }
 0x1ba   : > { %1153 = vmatmul.mubr.bf16.gmra.mrb[4].mxu0 %v655_v39 }
 0x1bb   : > { %1161 = vmatmul.mubr.bf16.gmra.mrb[4].mxu1 %v659_v40 }
 0x285   : > { %v1150_v41 = vpop.f32.mrb[0].mxu0 }
 0x286   : > { %v1158_v45 = vpop.f32.mrb[0].mxu1  ;;  %v774_v49 = vadd.f32 %v1150_v41, %v1036_v27  ;;  %v765_v51 = vpop.f32.mrb[1].mxu0 }
 0x287   : > { %v806_v50 = vadd.f32 %v1158_v45, %v1036_v27  ;;  %v797_v52 = vpop.f32.mrb[1].mxu1  ;;  %v766_v53 = vadd.f32 %v1036_v27, %v765_v51  ;;  %v1151_v55 = vpop.f32.mrb[2].mxu0 }
 0x288   : > { %v798_v54 = vadd.f32 %v1036_v27, %v797_v52  ;;  %v1159_v56 = vpop.f32.mrb[2].mxu1  ;;  %v830_v57 = vmax.f32 %v774_v49, 0.0  ;;  %v777_v59 = vadd.f32 %v1151_v55, %v1036_v27  ;;  %v768_v61 = vpop.f32.mrb[3].mxu0 }
 0x289   : > { %v838_v58 = vmax.f32 %v806_v50, 0.0  ;;  %v809_v60 = vadd.f32 %v1159_v56, %v1036_v27  ;;  %v800_v62 = vpop.f32.mrb[3].mxu1  ;;  %v828_v63 = vmax.f32 %v766_v53, 0.0  ;;  %v769_v1 = vadd.f32 %v1036_v27, %v768_v61 }
 0x28a   : > { %v836_v0 = vmax.f32 %v798_v54, 0.0  ;;  %v801_v2 = vadd.f32 %v1036_v27, %v800_v62  ;;  %v846_v3 = vadd.f32 %v830_v57, %v1943_v37  ;;  %v831_v5 = vmax.f32 %v777_v59, 0.0 }
 0x28b   : > { %v854_v4 = vadd.f32 %v838_v58, %v1949_v42  ;;  %v839_v6 = vmax.f32 %v809_v60, 0.0  ;;  %v844_v7 = vadd.f32 %v828_v63, %v1921_v22  ;;  %v829_v10 = vmax.f32 %v769_v1, 0.0 }
 0x28c   : > { %v852_v8 = vadd.f32 %v836_v0, %v1927_v24  ;;  %v837_v11 = vmax.f32 %v801_v2, 0.0  ;;  %862 = vst [vmem:[%s1862_s18 + $0x10] sm:$0xff] %v846_v3  ;;  %v847_v12 = vadd.f32 %v831_v5, %v1946_v38 }
 0x28d   : > { %870 = vst [vmem:[%s1862_s18 + $0x50] sm:$0xff] %v854_v4  ;;  %v855_v37 = vadd.f32 %v839_v6, %v1952_v43  ;;  %860 = vst [vmem:[%s1862_s18] sm:$0xff] %v844_v7  ;;  %v845_v42 = vadd.f32 %v829_v10, %v1924_v23  ;;  %v1154_v17 = vpop.f32.mrb[4].mxu0 }
 0x28e   : > { %868 = vst [vmem:[%s1862_s18 + $0x40] sm:$0xff] %v852_v8  ;;  %v853_v16 = vadd.f32 %v837_v11, %v1930_v25  ;;  %v1162_v22 = vpop.f32.mrb[4].mxu1  ;;  %863 = vst [vmem:[%s1862_s18 + $0x18] sm:$0xff] %v847_v12  ;;  %v790_v24 = vadd.f32 %v1154_v17, %v1036_v27  ;;  %v781_v19 = vpop.f32.mrb[5].mxu0 }
 0x28f   : > { %871 = vst [vmem:[%s1862_s18 + $0x58] sm:$0xff] %v855_v37  ;;  %v822_v18 = vadd.f32 %v1162_v22, %v1036_v27  ;;  %v813_v20 = vpop.f32.mrb[5].mxu1  ;;  %861 = vst [vmem:[%s1862_s18 + $0x8] sm:$0xff] %v845_v42  ;;  %v782_v21 = vadd.f32 %v1036_v27, %v781_v19  ;;  %v1155_v26 = vpop.f32.mrb[6].mxu0 }
 0x290   : > { %869 = vst [vmem:[%s1862_s18 + $0x48] sm:$0xff] %v853_v16  ;;  %v814_v38 = vadd.f32 %v1036_v27, %v813_v20  ;;  %v1163_v43 = vpop.f32.mrb[6].mxu1  ;;  %v834_v28 = vmax.f32 %v790_v24, 0.0  ;;  %v793_v30 = vadd.f32 %v1155_v26, %v1036_v27  ;;  %v784_v25 = vpop.f32.mrb[7].mxu0 }
 0x291   : > { %v842_v29 = vmax.f32 %v822_v18, 0.0  ;;  %v825_v23 = vadd.f32 %v1163_v43, %v1036_v27  ;;  %v816_v31 = vpop.f32.mrb[7].mxu1  ;;  %v832_v32 = vmax.f32 %v782_v21, 0.0  ;;  %v785_v34 = vadd.f32 %v1036_v27, %v784_v25 }
 0x292   : > { %v840_v33 = vmax.f32 %v814_v38, 0.0  ;;  %v817_v35 = vadd.f32 %v1036_v27, %v816_v31  ;;  %v850_v36 = vadd.f32 %v834_v28, %v1983_v9  ;;  %v835_v40 = vmax.f32 %v793_v30, 0.0 }
 0x293   : > { %v858_v39 = vadd.f32 %v842_v29, %v1989_v14  ;;  %v843_v41 = vmax.f32 %v825_v23, 0.0  ;;  %v848_v45 = vadd.f32 %v832_v32, %v1955_v44  ;;  %v833_v50 = vmax.f32 %v785_v34, 0.0 }
 0x294   : > { %v856_v49 = vadd.f32 %v840_v33, %v1961_v47  ;;  %v841_v51 = vmax.f32 %v817_v35, 0.0  ;;  %866 = vst [vmem:[%s1862_s18 + $0x30] sm:$0xff] %v850_v36  ;;  %v851_v27 = vadd.f32 %v835_v40, %v1986_v13 }
 0x295   : > { %874 = vst [vmem:[%s1862_s18 + $0x70] sm:$0xff] %v858_v39  ;;  %v859_v9 = vadd.f32 %v843_v41, %v1992_v15  ;;  %864 = vst [vmem:[%s1862_s18 + $0x20] sm:$0xff] %v848_v45  ;;  %v849_v14 = vadd.f32 %v833_v50, %v1958_v46 }
 0x296   : > { %872 = vst [vmem:[%s1862_s18 + $0x60] sm:$0xff] %v856_v49  ;;  %v857_v52 = vadd.f32 %v841_v51, %v1964_v48  ;;  %867 = vst [vmem:[%s1862_s18 + $0x38] sm:$0xff] %v851_v27 }
 0x297   : > { %875 = vst [vmem:[%s1862_s18 + $0x78] sm:$0xff] %v859_v9  ;;  %865 = vst [vmem:[%s1862_s18 + $0x28] sm:$0xff] %v849_v14 }
 0x298   : > { %873 = vst [vmem:[%s1862_s18 + $0x68] sm:$0xff] %v857_v52 }
 0x299 PF: > { %s1051_s13 = sshll.u32 %s1559_s0, 11  ;;  %s2152_s2 = sld [smem:[#allocation22_spill]] }
 0x29a   : > { %s890_s30 = sshll.u32 %s1862_s18, 4  ;;  %s2048_s16 = scalar_lea.sflag [#allocation7], %s261_s3  ;;  %s2044_s30 = int_to_ptr.vmem [resolvable:$true] %s890_s30 }
 0x29b   : > { %s1445_s23 = scalar_lea.vmem %s2044_s30, 2048  ;;  %p2153_p9 = scmp.ne.s32.totalorder %s2137_s12, 0 }
 0x29c   : > { %p1446_p6 = scmp.ne.s32.totalorder %s2044_s30, %s1445_s23  ;;  %s1582_s0 = smov [#allocation11]  }
 0x29d   : > { %s1449_s14 = sshll.u32 %s1582_s0, 4  ;;  %s1450_s14 = int_to_ptr.vmem [resolvable:$false] %s1449_s14 }
 0x29e   : > { %p1447_p10 = pnand %p1446_p6, %p2153_p9  ;;  %s1451_s8 = scalar_lea.vmem %s1450_s14, 4096 }
 0x29f   : > { %s2041_s9 = scalar_lea.hbm %s2152_s2, %s1051_s13  ;;  %p1452_p12 = scmp.lt.s32.totalorder %s2044_s30, %s1450_s14 }
 0x2a0   : > { %p1448_p5 = pneg %p1447_p10  ;;  %p1453_p11 = scmp.lt.s32.totalorder %s1451_s8, %s1445_s23 }
 0x2a2   : > { %p1454_p1 = por %p1453_p11, %p1452_p12 }
 0x2a4   : > { %p1455_p8 = pnand %p1454_p1, %p1448_p5 }
 0x2a6   : > { %1458 = shalt.err (!%p1455_p8)
}
 0x2a7   : > { %s1459_s3 = scalar_lea.hbm %s2041_s9, 2048  ;;  %s1463_s20 = scalar_lea.hbm %s2152_s2, 8192 }
 0x2a8   : > { %p1460_p4 = scmp.ne.s32.totalorder %s2041_s9, %s1459_s3  ;;  %p1464_p2 = scmp.lt.u32.totalorder %s2041_s9, %s2152_s2 }
 0x2a9   : > { %p1465_p0 = scmp.lt.u32.totalorder %s1463_s20, %s1459_s3  ;;  %p1467_p6 = scmp.lt.u32.totalorder %s1459_s3, %s2041_s9 }
 0x2aa   : > { %p1461_p3 = pnand %p1460_p4, %p2153_p9 }
 0x2ab   : > { %p1466_p7 = por %p1465_p0, %p1464_p2 }
 0x2ac   : > { %p1462_p13 = pneg %p1461_p3 }
 0x2ad   : > { %p1468_p10 = por %p1467_p6, %p1466_p7 }
 0x2af   : > { %p1469_p5 = pnand %p1468_p10, %p1462_p13 }
 0x2b1   : > { %1472 = shalt.err (!%p1469_p5)
}
 0x2b2   : > { %s1583_s15 = smov 128   ;;  %s1584_s5 = smov 8  }
 0x2b3   : > { %1206 = dma.vmem_to_hbm [thread:$0]  (%p2153_p9), %s2044_s30, 2048, %s2041_s9, %s2048_s16, %s1583_s15, %s1583_s15, %s1584_s5  }
 0x2b4 PF: > { %s2154_s29 = sld [smem:[#allocation17_spill]]  ;;  %s2155_s13 = sld [smem:[#allocation15_spill]] }
 0x2b5   : > { %s2156_s10 = sld [smem:[#allocation18_spill]] }
 0x2ba   : > { %p1228_p12 = scmp.ge.s32.totalorder %s2154_s29, 2  ;;  %s905_s7 = sand.u32 1, %s2155_s13  }
 0x2bb   : > { %p2157_p11 = scmp.ne.s32.totalorder %s2156_s10, 0  ;;  %s906_s23 = scalar_lea.sflag [#allocation7], %s905_s7 }
 0x2bd   : > { %p1220_p1 = pnand %p1228_p12, %p2157_p11 }
 0x2bf   : > { %1526 = dma.done.wait (!%p1220_p1), %s906_s23, 2048  }
 0x2c0   : > { %1528 = vsyncadd (!%p1220_p1), %s906_s23, 4294965248  ;;  %s23_s29 = sadd.s32 1, %s2154_s29   ;;  %s2158_s26 = sld [smem:[#allocation16_spill]] }
 0x2c1   : > { %p20_p8 = scmp.ge.s32.totalorder %s23_s29, 10   ;;  %s2159_s12 = sld [smem:[#allocation19_spill]] }
 0x2c2   : > { %s2160_s20 = smov %s1535_s21  ;;  %s2161_s21 = smov %s1539_s22 }
 0x2c3   : > { %s2162_s22 = smov %s1807_s27  ;;  %s2163_s23 = smov %s1547_s24 }
 0x2c4   : > { %s2164_s24 = smov %s1551_s25  ;;  %s2165_s25 = smov %s1812_s17 }
 0x2c5   : > { %s2166_s0 = smov %s1567_s28  ;;  %s2168_s28 = smov %s2174_s6 }
 0x2c6   :  { %22 = sbr.rel (!%p20_p8) target bundleno = 15 (0xf), region = 99 }
 0x2c7   : > { %s2167_s27 = smov %s2159_s12 }
 0x2cd   :  { %911 = vsyncpa [#allocation6], 1 }
 0x2ce   :  { %913 = vsyncpa [#allocation6 + $0x1], 1 }
 0x2cf   :  { %914 = vsyncpa [#allocation9], 1 }
 0x2d0   :  { %915 = vsyncpa [#allocation7], 1 }
 0x2d1   :  { %917 = vsyncpa [#allocation7 + $0x1], 1 }

</bundles_post_ra>
